<compile_context>
chip_gen: v6e
topology: v6e:2x2x1
jax: 0.10.0
libtpu: 0.0.40
codegen_flags: <defaults>
</compile_context>

<pallas_src>
import functools
import math

import jax
import jax.numpy as jnp
import numpy as np
from jax import lax
from jax.experimental import pallas as pl
from jax.experimental.pallas import tpu as pltpu

_LANE_TARGET = 512            # fold trailing dims of x until >= this many lanes
_FOLD_CAP = 65536             # ...but keep a single folded row <= 64K elements
_KL_TILE_BYTES = 2 * 1024 * 1024
_VMEM_LIMIT = 32 * 1024 * 1024


def _cdiv(a, b):
    return (a + b - 1) // b


def _round_up(a, b):
    return _cdiv(a, b) * b


def _chip_kind():
    try:
        return jax.devices()[0].device_kind.lower()
    except Exception:
        return ""


def _fold_trailing(shape, target=_LANE_TARGET, cap=_FOLD_CAP):
    """Merge trailing dims (a free, layout-preserving reshape) into a lane dim."""
    dims = list(shape)
    lane = 1
    while dims and lane < target and (lane == 1 or lane * dims[-1] <= cap):
        lane *= dims.pop()
    rows = 1
    for d in dims:
        rows *= d
    return max(rows, 1), max(lane, 1)


def _row_quantum(itemsize):
    # native sublane quantum: 8 rows for 4-byte, 16 for 2-byte, 32 for 1-byte
    return max(8, 32 // max(int(itemsize), 1))


def _choose_tile(total, unit_bytes, budget_bytes, quantum):
    """Largest tile extent fitting `budget_bytes`; a multiple of `quantum`
    unless it covers `total` exactly (a full-extent block is always legal)."""
    fit = max(int(budget_bytes) // max(int(unit_bytes), 1), 1)
    if fit >= total:
        return total
    return max(quantum, (fit // quantum) * quantum)


def _run_when(conds, body):
    """Run `body` under the conjunction of `conds` (or unconditionally)."""
    if not conds:
        body()
        return
    c = conds[0]
    for extra in conds[1:]:
        c = jnp.logical_and(c, extra)
    pl.when(c)(body)


# ---------------------------------------------------------------------------
# Fused kernel: accumulates MSE-sum and (simplified) KL-sum in VMEM scratch.
# ---------------------------------------------------------------------------
def _fused_loss_kernel(x_ref, xh_ref, lg_ref, out_ref, mse_acc, kl_acc, *,
                       ncores, n_inner,
                       grid_mse, half_mse, mse_tile, mse_rows,
                       grid_kl, half_kl, kl_tile, kl_rows, kl_transposed,
                       inv_k):
    p = pl.program_id(0) if ncores > 1 else 0
    j = pl.program_id(1)

    @pl.when(j == 0)
    def _init():
        mse_acc[...] = jnp.zeros_like(mse_acc)
        kl_acc[...] = jnp.zeros_like(kl_acc)

    # ----- MSE partial: sum((x_hat - x)^2) over this tile (pure VPU adds) -----
    mse_idx = (p * half_mse + j) if ncores > 1 else j
    mse_tail = grid_mse * mse_tile > mse_rows            # static

    def _mse_body():
        d = xh_ref[...].astype(jnp.float32) - x_ref[...].astype(jnp.float32)
        sq = d * d
        if mse_tail:
            row = mse_idx * mse_tile + lax.broadcasted_iota(
                jnp.int32, (sq.shape[0], 1), 0)
            sq = jnp.where(row < mse_rows, sq, 0.0)       # NaN-safe select
        tm, lane = sq.shape
        if tm % 8 == 0:
            # layout-free split of the row axis into sublane groups; vreg adds
            mse_acc[...] += sq.reshape(tm // 8, 8, lane).sum(axis=0)
        else:
            # small full-extent tile whose row count is not a multiple of 8
            mse_acc[...] += jnp.sum(sq, axis=0, keepdims=True)

    mse_conds = []
    if n_inner > half_mse:
        mse_conds.append(j < half_mse)
    if ncores > 1 and ncores * half_mse > grid_mse:
        mse_conds.append(mse_idx < grid_mse)
    _run_when(mse_conds, _mse_body)

    # ----- KL partial: per-row  lse(z) - (1/K)*sum(z)  (log(1/K) added later) --
    kl_idx = (p * half_kl + j) if ncores > 1 else j
    kl_tail = grid_kl * kl_tile > kl_rows                 # static

    def _kl_body():
        z = lg_ref[...].astype(jnp.float32)
        if kl_transposed:
            # z: (K, tk) — codebook reductions along sublanes; lane-dense partials.
            m = jnp.max(z, axis=0, keepdims=True)                      # (1, tk)
            se = jnp.sum(jnp.exp(z - m), axis=0, keepdims=True)        # (1, tk)
            kl_part = m + jnp.log(se) - inv_k * jnp.sum(z, axis=0, keepdims=True)
            if kl_tail:
                col = kl_idx * kl_tile + lax.broadcasted_iota(
                    jnp.int32, kl_part.shape, 1)
                kl_part = jnp.where(col < kl_rows, kl_part, 0.0)
            kl_acc[...] += kl_part                       # full-lane stores
        else:
            # z: (tk, K) with K >= 128 — codebook reductions along lanes.
            m = jnp.max(z, axis=-1, keepdims=True)                     # (tk, 1)
            se = jnp.sum(jnp.exp(z - m), axis=-1, keepdims=True)
            kl_part = m + jnp.log(se) - inv_k * jnp.sum(z, axis=-1, keepdims=True)
            if kl_tail:
                row = kl_idx * kl_tile + lax.broadcasted_iota(
                    jnp.int32, kl_part.shape, 0)
                kl_part = jnp.where(row < kl_rows, kl_part, 0.0)
            kl_acc[...] += jnp.sum(kl_part, keepdims=True)             # (1, 1)

    kl_conds = []
    if n_inner > half_kl:
        kl_conds.append(j < half_kl)
    if ncores > 1 and ncores * half_kl > grid_kl:
        kl_conds.append(kl_idx < grid_kl)
    _run_when(kl_conds, _kl_body)

    # --- one cross-lane reduce + SMEM scalar writes per core, last step only ---
    @pl.when(j == pl.num_programs(1) - 1)
    def _final():
        out_ref[0, 0] = jnp.sum(mse_acc[...])
        out_ref[0, 1] = jnp.sum(kl_acc[...])


# ---------------------------------------------------------------------------
# Wrapper
# ---------------------------------------------------------------------------
def dvae_elbo_loss(x, x_hat, logits, *, kl_div_weight, codebook_size,
                   mse_tile_bytes=None, kl_tile_bytes=None):
    assert x.shape == x_hat.shape
    K = logits.shape[-1]
    assert K == codebook_size
    numel = int(np.prod(x.shape))
    rows_k = int(np.prod(logits.shape[:-1]))
    batch = logits.shape[0]

    kind = _chip_kind()
    is_v7 = "v7" in kind
    ncores = 2 if is_v7 else 1                        # v5e/v6e: single TC
    if mse_tile_bytes is None:
        mse_tile_bytes = (2 if is_v7 else 4) * 1024 * 1024
    if kl_tile_bytes is None:
        kl_tile_bytes = _KL_TILE_BYTES

    # ------- MSE stream: free trailing-dim merge; tail masked in-kernel -------
    mse_rows, mse_lane = _fold_trailing(x.shape)
    x2 = x.reshape(mse_rows, mse_lane)
    xh2 = x_hat.reshape(mse_rows, mse_lane)
    x_isz = jnp.dtype(x.dtype).itemsize
    mse_tile = _choose_tile(mse_rows, mse_lane * x_isz, mse_tile_bytes,
                            _row_quantum(x_isz))
    grid_mse = _cdiv(mse_rows, mse_tile)

    # ------- KL stream: lane-dense layout, no padding copies -------
    lg2 = logits.reshape(rows_k, K)                   # free reshape
    lg_isz = jnp.dtype(logits.dtype).itemsize
    kl_transposed = K < 128
    if kl_transposed:
        # Small codebook: one tiny transpose copy buys a dense 128-lane layout.
        lg_in = lg2.T                                  # (K, rows_k)
        kl_tile = _choose_tile(rows_k, K * lg_isz, kl_tile_bytes, 128)
        kl_block = (K, kl_tile)
        kl_acc_shape = (1, kl_tile)
    else:
        lg_in = lg2                                    # (rows_k, K), lane-dense
        kl_tile = _choose_tile(rows_k, _round_up(K, 128) * lg_isz,
                               kl_tile_bytes, _row_quantum(lg_isz))
        kl_block = (kl_tile, K)
        kl_acc_shape = (1, 1)
    grid_kl = _cdiv(rows_k, kl_tile)

    # ------- fused (cores, steps) grid; clamp only where a stream runs short --
    half_mse = _cdiv(grid_mse, ncores)
    half_kl = _cdiv(grid_kl, ncores)
    n_inner = max(half_mse, half_kl)

    def _tiled_index(half, grid_total):
        clamp_j = n_inner > half
        clamp_total = ncores * half > grid_total

        def idx(p, j):
            jj = jnp.minimum(j, half - 1) if clamp_j else j
            i = (p * half + jj) if ncores > 1 else jj
            return jnp.minimum(i, grid_total - 1) if clamp_total else i

        return idx

    mse_idx_fn = _tiled_index(half_mse, grid_mse)
    kl_idx_fn = _tiled_index(half_kl, grid_kl)
    mse_map = lambda p, j: (mse_idx_fn(p, j), 0)
    if kl_transposed:
        kl_map = lambda p, j: (0, kl_idx_fn(p, j))
    else:
        kl_map = lambda p, j: (kl_idx_fn(p, j), 0)

    mse_acc_shape = (8 if mse_tile % 8 == 0 else 1, mse_lane)

    kernel = functools.partial(
        _fused_loss_kernel,
        ncores=ncores, n_inner=n_inner,
        grid_mse=grid_mse, half_mse=half_mse, mse_tile=mse_tile,
        mse_rows=mse_rows,
        grid_kl=grid_kl, half_kl=half_kl, kl_tile=kl_tile, kl_rows=rows_k,
        kl_transposed=kl_transposed, inv_k=1.0 / float(K))

    dim_sem = ((pltpu.CORE_PARALLEL, pltpu.ARBITRARY) if ncores > 1
               else (pltpu.ARBITRARY, pltpu.ARBITRARY))

    sums = pl.pallas_call(
        kernel,
        out_shape=jax.ShapeDtypeStruct((ncores, 2), jnp.float32),
        grid_spec=pltpu.PrefetchScalarGridSpec(
            num_scalar_prefetch=0,
            grid=(ncores, n_inner),
            in_specs=[
                pl.BlockSpec((mse_tile, mse_lane), mse_map),
                pl.BlockSpec((mse_tile, mse_lane), mse_map),
                pl.BlockSpec(kl_block, kl_map),
            ],
            out_specs=pl.BlockSpec((1, 2), lambda p, j: (p, 0),
                                   memory_space=pltpu.SMEM),
            scratch_shapes=[
                pltpu.VMEM(mse_acc_shape, jnp.float32),  # MSE vector accumulator
                pltpu.VMEM(kl_acc_shape, jnp.float32),   # lane-dense KL accumulator
            ],
        ),
        compiler_params=pltpu.CompilerParams(
            dimension_semantics=dim_sem,
            vmem_limit_bytes=_VMEM_LIMIT,
        ),
    )(x2, xh2, lg_in)

    mse_sum = jnp.sum(sums[:, 0])
    # Add the constant part of the per-row KL once per *valid* row.
    kl_sum = jnp.sum(sums[:, 1]) + np.float32(rows_k * math.log(1.0 / K))

    mse_loss = mse_sum / np.float32(numel)
    elbo_loss = kl_sum / np.float32(batch)          # 'batchmean' over dim 0
    loss = mse_loss + np.float32(kl_div_weight) * elbo_loss
    return loss, mse_loss, elbo_loss


# ---------------------------------------------------------------------------
# Pure-JAX reference (mirrors the PyTorch forward exactly)
# ---------------------------------------------------------------------------
def _reference(x, x_hat, logits, kl_div_weight, codebook_size):
    log_sm = jax.nn.log_softmax(logits, axis=-1)
    log_u = jnp.log(jnp.ones_like(logits) / codebook_size)
    kl = jnp.exp(log_u) * (log_u - log_sm)
    elbo = jnp.sum(kl) / logits.shape[0]
    mse = jnp.mean((x_hat - x) ** 2)
    return mse + kl_div_weight * elbo, mse, elbo


def _check(got, want, rtol=1e-5, atol=1e-5):
    for g, w in zip(got, want):
        assert np.allclose(np.asarray(g), np.asarray(w), rtol=rtol, atol=atol), \
            (np.asarray(g), np.asarray(w))


if __name__ == "__main__":
    key = jax.random.PRNGKey(0)
    k1, k2, k3 = jax.random.split(key, 3)

    B, C, H, W = 2, 4, 16, 16           # image shapes (NCHW, matches PyTorch)
    S, K = 8, 32                        # token seq length, codebook size
    kl_div_weight = 0.1

    x = jax.random.normal(k1, (B, C, H, W), dtype=jnp.float32)
    x_hat = jax.random.normal(k2, (B, C, H, W), dtype=jnp.float32)
    logits = jax.random.normal(k3, (B, S, K), dtype=jnp.float32)

    fn = jax.jit(functools.partial(
        dvae_elbo_loss, kl_div_weight=kl_div_weight, codebook_size=K))
    out = fn(x, x_hat, logits)
    jax.block_until_ready(out)
    _check(out, _reference(x, x_hat, logits, kl_div_weight, K))

    # Secondary check: multi-tile + tail masking on BOTH streams (transposed KL
    # path), forced via small tile budgets so it stays small.
    j1, j2, j3 = jax.random.split(jax.random.PRNGKey(1), 3)
    x_b = jax.random.normal(j1, (3, 5, 24, 24), dtype=jnp.float32)
    xh_b = jax.random.normal(j2, (3, 5, 24, 24), dtype=jnp.float32)
    lg_b = jax.random.normal(j3, (3, 50, 32), dtype=jnp.float32)
    got = dvae_elbo_loss(x_b, xh_b, lg_b, kl_div_weight=0.25, codebook_size=32,
                         mse_tile_bytes=16 * 1024, kl_tile_bytes=16 * 1024)
    _check(got, _reference(x_b, xh_b, lg_b, 0.25, 32))

    # Third check: K >= 128 (row-layout KL path) with a tail tile, plus the
    # clamped index-map path (KL stream longer than the MSE stream).
    i1, i2, i3 = jax.random.split(jax.random.PRNGKey(2), 3)
    x_c = jax.random.normal(i1, (2, 3, 17, 19), dtype=jnp.float32)
    xh_c = jax.random.normal(i2, (2, 3, 17, 19), dtype=jnp.float32)
    lg_c = jax.random.normal(i3, (2, 10, 256), dtype=jnp.float32)
    got = dvae_elbo_loss(x_c, xh_c, lg_c, kl_div_weight=0.5, codebook_size=256,
                         kl_tile_bytes=8 * 1024)
    _check(got, _reference(x_c, xh_c, lg_c, 0.5, 256))

    print("KERNEL_OK")
</pallas_src>

<mosaic_0001>
module attributes {stable_mosaic.version = 11 : i64} {
  func.func @_fused_loss_kernel(%arg0: i32, %arg1: i32, %arg2: memref<2x1024xf32, #tpu.memory_space<vmem>>, %arg3: memref<2x1024xf32, #tpu.memory_space<vmem>>, %arg4: memref<32x16xf32, #tpu.memory_space<vmem>>, %arg5: memref<1x2xf32, #tpu.memory_space<smem>>, %arg6: memref<1x1024xf32, #tpu.memory_space<vmem>>, %arg7: memref<1x16xf32, #tpu.memory_space<vmem>>) attributes {dimension_semantics = [#tpu.dimension_semantics<arbitrary>, #tpu.dimension_semantics<arbitrary>], iteration_bounds = array<i64: 1, 1>, scalar_prefetch = 0 : i64, scratch_operands = 2 : i64, tpu.core_type = #tpu.core_type<tc>, window_params = [{transform_indices = @transform_0, window_bounds = array<i64: 2, 1024>}, {transform_indices = @transform_1, window_bounds = array<i64: 2, 1024>}, {transform_indices = @transform_2, window_bounds = array<i64: 32, 16>}, {transform_indices = @transform_3, window_bounds = array<i64: 1, 2>}]} {
    %c0_i32 = arith.constant 0 : i32
    %0 = arith.cmpi eq, %arg1, %c0_i32 : i32
    %1 = arith.extui %0 : i1 to i32
    %c0_i32_0 = arith.constant 0 : i32
    %2 = arith.cmpi ne, %1, %c0_i32_0 : i32
    scf.if %2 {
      %cst_20 = arith.constant 0.000000e+00 : f32
      %33 = vector.broadcast %cst_20 : f32 to vector<1x1024xf32>
      %c0_21 = arith.constant 0 : index
      %c0_22 = arith.constant 0 : index
      %34 = vector.load %arg6[%c0_21, %c0_22] : memref<1x1024xf32, #tpu.memory_space<vmem>>, vector<1x1024xf32>
      tpu.vector_store %arg6[%c0_21, %c0_22], %33 {strides = array<i32>} : memref<1x1024xf32, #tpu.memory_space<vmem>>, vector<1x1024xf32>,
      %cst_23 = arith.constant 0.000000e+00 : f32
      %35 = vector.broadcast %cst_23 : f32 to vector<1x16xf32>
      %c0_24 = arith.constant 0 : index
      %c0_25 = arith.constant 0 : index
      %36 = vector.load %arg7[%c0_24, %c0_25] : memref<1x16xf32, #tpu.memory_space<vmem>>, vector<1x16xf32>
      tpu.vector_store %arg7[%c0_24, %c0_25], %35 {strides = array<i32>} : memref<1x16xf32, #tpu.memory_space<vmem>>, vector<1x16xf32>,
    } else {
    }
    %c0 = arith.constant 0 : index
    %c0_1 = arith.constant 0 : index
    %3 = vector.load %arg3[%c0, %c0_1] : memref<2x1024xf32, #tpu.memory_space<vmem>>, vector<2x1024xf32>
    %c0_2 = arith.constant 0 : index
    %c0_3 = arith.constant 0 : index
    %4 = vector.load %arg2[%c0_2, %c0_3] : memref<2x1024xf32, #tpu.memory_space<vmem>>, vector<2x1024xf32>
    %5 = arith.subf %3, %4 : vector<2x1024xf32>
    %6 = arith.mulf %5, %5 : vector<2x1024xf32>
    %c0_4 = arith.constant 0 : index
    %c0_5 = arith.constant 0 : index
    %7 = vector.load %arg6[%c0_4, %c0_5] : memref<1x1024xf32, #tpu.memory_space<vmem>>, vector<1x1024xf32>
    %cst = arith.constant dense<0.000000e+00> : vector<1024xf32>
    %8 = vector.multi_reduction <add>, %6, %cst [0] : vector<2x1024xf32> to vector<1024xf32>
    %9 = vector.shape_cast %8 : vector<1024xf32> to vector<1x1024xf32>
    %10 = arith.addf %7, %9 : vector<1x1024xf32>
    %c0_6 = arith.constant 0 : index
    %c0_7 = arith.constant 0 : index
    %11 = vector.load %arg6[%c0_6, %c0_7] : memref<1x1024xf32, #tpu.memory_space<vmem>>, vector<1x1024xf32>
    tpu.vector_store %arg6[%c0_6, %c0_7], %10 {strides = array<i32>} : memref<1x1024xf32, #tpu.memory_space<vmem>>, vector<1x1024xf32>,
    %c0_8 = arith.constant 0 : index
    %c0_9 = arith.constant 0 : index
    %12 = vector.load %arg4[%c0_8, %c0_9] : memref<32x16xf32, #tpu.memory_space<vmem>>, vector<32x16xf32>
    %cst_10 = arith.constant dense<0xFF800000> : vector<16xf32>
    %13 = vector.multi_reduction <maximumf>, %12, %cst_10 [0] : vector<32x16xf32> to vector<16xf32>
    %14 = vector.shape_cast %13 : vector<16xf32> to vector<1x16xf32>
    %15 = vector.broadcast %14 : vector<1x16xf32> to vector<32x16xf32>
    %16 = arith.subf %12, %15 : vector<32x16xf32>
    %17 = math.exp %16 : vector<32x16xf32>
    %cst_11 = arith.constant dense<0.000000e+00> : vector<16xf32>
    %18 = vector.multi_reduction <add>, %17, %cst_11 [0] : vector<32x16xf32> to vector<16xf32>
    %19 = vector.shape_cast %18 : vector<16xf32> to vector<1x16xf32>
    %20 = math.log %19 : vector<1x16xf32>
    %21 = arith.addf %14, %20 : vector<1x16xf32>
    %cst_12 = arith.constant dense<0.000000e+00> : vector<16xf32>
    %22 = vector.multi_reduction <add>, %12, %cst_12 [0] : vector<32x16xf32> to vector<16xf32>
    %23 = vector.shape_cast %22 : vector<16xf32> to vector<1x16xf32>
    %cst_13 = arith.constant 3.125000e-02 : f32
    %24 = vector.broadcast %cst_13 : f32 to vector<1x16xf32>
    %25 = arith.mulf %24, %23 : vector<1x16xf32>
    %26 = arith.subf %21, %25 : vector<1x16xf32>
    %c0_14 = arith.constant 0 : index
    %c0_15 = arith.constant 0 : index
    %27 = vector.load %arg7[%c0_14, %c0_15] : memref<1x16xf32, #tpu.memory_space<vmem>>, vector<1x16xf32>
    %28 = arith.addf %27, %26 : vector<1x16xf32>
    %c0_16 = arith.constant 0 : index
    %c0_17 = arith.constant 0 : index
    %29 = vector.load %arg7[%c0_16, %c0_17] : memref<1x16xf32, #tpu.memory_space<vmem>>, vector<1x16xf32>
    tpu.vector_store %arg7[%c0_16, %c0_17], %28 {strides = array<i32>} : memref<1x16xf32, #tpu.memory_space<vmem>>, vector<1x16xf32>,
    %c0_i32_18 = arith.constant 0 : i32
    %30 = arith.cmpi eq, %arg1, %c0_i32_18 : i32
    %31 = arith.extui %30 : i1 to i32
    %c0_i32_19 = arith.constant 0 : i32
    %32 = arith.cmpi ne, %31, %c0_i32_19 : i32
    scf.if %32 {
      %c0_20 = arith.constant 0 : index
      %c0_21 = arith.constant 0 : index
      %33 = vector.load %arg6[%c0_20, %c0_21] : memref<1x1024xf32, #tpu.memory_space<vmem>>, vector<1x1024xf32>
      %34 = vector.shape_cast %33 : vector<1x1024xf32> to vector<1x1x1024xf32>
      %cst_22 = arith.constant dense<0.000000e+00> : vector<1xf32>
      %35 = vector.multi_reduction <add>, %34, %cst_22 [1, 2] : vector<1x1x1024xf32> to vector<1xf32>
      %36 = vector.shape_cast %35 : vector<1xf32> to vector<1x1x1xf32>
      %37 = vector.extract %36[0, 0, 0] : f32 from vector<1x1x1xf32>
      %c0_23 = arith.constant 0 : index
      %c0_24 = arith.constant 0 : index
      %38 = memref.load %arg5[%c0_23, %c0_24] : memref<1x2xf32, #tpu.memory_space<smem>>
      memref.store %37, %arg5[%c0_23, %c0_24] : memref<1x2xf32, #tpu.memory_space<smem>>
      %c0_25 = arith.constant 0 : index
      %c0_26 = arith.constant 0 : index
      %39 = vector.load %arg7[%c0_25, %c0_26] : memref<1x16xf32, #tpu.memory_space<vmem>>, vector<1x16xf32>
      %40 = vector.shape_cast %39 : vector<1x16xf32> to vector<1x1x16xf32>
      %cst_27 = arith.constant dense<0.000000e+00> : vector<1xf32>
      %41 = vector.multi_reduction <add>, %40, %cst_27 [1, 2] : vector<1x1x16xf32> to vector<1xf32>
      %42 = vector.shape_cast %41 : vector<1xf32> to vector<1x1x1xf32>
      %43 = vector.extract %42[0, 0, 0] : f32 from vector<1x1x1xf32>
      %c0_28 = arith.constant 0 : index
      %c1 = arith.constant 1 : index
      %44 = memref.load %arg5[%c0_28, %c1] : memref<1x2xf32, #tpu.memory_space<smem>>
      memref.store %43, %arg5[%c0_28, %c1] : memref<1x2xf32, #tpu.memory_space<smem>>
    } else {
    }
    return
  }
  func.func @transform_0(%arg0: i32, %arg1: i32) -> (i32, i32) {
    %c0_i32 = arith.constant 0 : i32
    %c0_i32_0 = arith.constant 0 : i32
    return %arg1, %c0_i32 : i32, i32
  }
  func.func @transform_1(%arg0: i32, %arg1: i32) -> (i32, i32) {
    %c0_i32 = arith.constant 0 : i32
    %c0_i32_0 = arith.constant 0 : i32
    return %arg1, %c0_i32 : i32, i32
  }
  func.func @transform_2(%arg0: i32, %arg1: i32) -> (i32, i32) {
    %c0_i32 = arith.constant 0 : i32
    %c0_i32_0 = arith.constant 0 : i32
    return %c0_i32, %arg1 : i32, i32
  }
  func.func @transform_3(%arg0: i32, %arg1: i32) -> (i32, i32) {
    %c0_i32 = arith.constant 0 : i32
    %c0_i32_0 = arith.constant 0 : i32
    return %arg0, %c0_i32 : i32, i32
  }
}

</mosaic_0001>

<bundles_post_ra>
// kernel: dvae_elbo_loss.1
= control target key start
LH: loop header
LB: loop body
LE: loop exit
PB: predicated region body
PF: predicated region fallthrough
CT: control target
= control target key end

     0   :  { %v37_v3 = vlaneseq  ;;  %v389_v6 = vmov 1983009808   ;;  %v390_v10 = vmov 1966171168   ;;  %vm20_vm0 = vcmask 122880   ;;  %s524_s0 = inlined_call_operand.vmem [shape: f32[2,1024], index: 0, kind: input, shape index: {}]   ;;  %s525_s1 = inlined_call_operand.vmem [shape: f32[2,1024], index: 1, kind: input, shape index: {}]   ;;  %s526_s2 = inlined_call_operand.vmem [shape: f32[32,16], index: 2, kind: input, shape index: {}]   ;;  %s527_s3 = inlined_call_operand.vmem [shape: f32[1,2], index: 3, kind: output, shape index: {}]  }
   0x1   :  { %v22_v0 = vld [vmem:[%s525_s1] sm:$0xff]  ;;  %v23_v1 = vld [vmem:[%s525_s1 + $0x8] sm:$0xff]  ;;  %v35_v7 = vunpack.c.l.s4 %v389_v6  ;;  %v145_v11 = vunpack.c.l.s4 %v390_v10 }
   0x2   :  { %v24_v2 = vld [vmem:[%s524_s0] sm:$0xff]  ;;  %v25_v4 = vld [vmem:[%s524_s0 + $0x8] sm:$0xff]  ;;  %v425_v9 = vshrl.u32 %v37_v3, 7 }
   0x3   :  { %v26_v5 = vsub.f32 %v22_v0, %v24_v2  ;;  %v27_v8 = vsub.f32 %v23_v1, %v25_v4 }
   0x4   :  { %8 = vsyncpa [#allocation5], 0  ;;  %v36_v13 = vunpack.c.0.s8 %v35_v7  ;;  %v146_v15 = vunpack.c.0.s8 %v145_v11  ;;  %v391_v16 = vmov 0.0   ;;  %v432_v19 = vld [vmem:[%s526_s2] sm:$0xff]  ;;  %v437_v20 = vld [vmem:[%s526_s2 + $0x8] sm:$0xff]  ;;  %vm196_vm1 = vcmask 130048  }
   0x5   :  { %v28_v12 = vmul.f32 %v26_v5, %v26_v5  ;;  %v29_v14 = vmul.f32 %v27_v8, %v27_v8  ;;  %21 = vst.msk [vmem:[#allocation3] sm:$0x1] %vm20_vm0, %v391_v16  ;;  %vm75_vm2 = vcmask 1041408   ;;  %v444_v27 = vsel %vm196_vm1, %v432_v19, -inf  ;;  %v461_v10 = vld [vmem:[%s526_s2 + $0x10] sm:$0xff]  ;;  %s348_s28 = sshll.u32 %s527_s3, 4  ;;  %s349_s28 = int_to_ptr.vmem [resolvable:$true] %s348_s28 }
   0x6   :  { %v39_v18 = vsub.s32 %v36_v13, %v425_v9  ;;  %v440_v26 = vsub.s32 %v146_v15, %v425_v9  ;;  %v448_v28 = vsel %vm196_vm1, %v437_v20, -inf  ;;  %v466_v15 = vld [vmem:[%s526_s2 + $0x18] sm:$0xff]  ;;  %vm302_vm3 = vcmask 1040384   ;;  %s375_s30 = scalar_lea.vmem %s349_s28, 16  ;;  %p380_p1 = scmp.lt.s32.totalorder %s349_s28, %s349_s28 }
   0x7   :  { %v33_v17 = vcombine.high %v28_v12, %v28_v12  ;;  %v50_v21 = vcombine.high %v29_v14, %v29_v14  ;;  %p376_p0 = scmp.ne.s32.totalorder %s349_s28, %s375_s30  ;;  %p381_p2 = scmp.lt.s32.totalorder %s375_s30, %s375_s30 }
   0x8   :  { %v40_v22 = vrot.slane %v28_v12, %v39_v18  ;;  %v57_v24 = vrot.slane %v29_v14, %v39_v18 }
   0x9   :  { %v47_v23 = vrot.slane %v33_v17, %v39_v18  ;;  %v64_v25 = vrot.slane %v50_v21, %v39_v18  ;;  %p382_p3 = por %p381_p2, %p380_p1 }
   0xa   :  { %v48_v29 = vcombine.high %v40_v22, %v40_v22  ;;  %v65_v31 = vcombine.high %v57_v24, %v57_v24  ;;  %v76_v32 = vsel %vm75_vm2, %v40_v22, 0.0  ;;  %v104_v36 = vsel %vm75_vm2, %v57_v24, 0.0 }
   0xb   :  { %v49_v30 = vcombine.high %v47_v23, %v47_v23  ;;  %v66_v33 = vcombine.high %v64_v25, %v64_v25  ;;  %v77_v34 = vrot.slane %v76_v32, 4  ;;  %v90_v35 = vsel %vm75_vm2, %v47_v23, 0.0  ;;  %p383_p4 = pnand %p382_p3, %p376_p0 }
   0xc   :  { %v83_v37 = vsel %vm75_vm2, %v48_v29, 0.0  ;;  %v91_v38 = vrot.slane %v90_v35, 4  ;;  %v105_v40 = vrot.slane %v104_v36, 4  ;;  %v111_v44 = vsel %vm75_vm2, %v65_v31, 0.0 }
   0xd   :  { %v97_v39 = vsel %vm75_vm2, %v49_v30, 0.0  ;;  %v78_v41 = vadd.f32 %v77_v34, %v76_v32  ;;  %v84_v42 = vrot.slane %v83_v37, 4  ;;  %v112_v47 = vrot.slane %v111_v44, 4 }
   0xe   :  { %v98_v43 = vrot.slane %v97_v39, 4  ;;  %v92_v45 = vadd.f32 %v91_v38, %v90_v35  ;;  %v106_v46 = vadd.f32 %v105_v40, %v104_v36  ;;  %v118_v48 = vsel %vm75_vm2, %v64_v25, 0.0 }
   0xf   :  { %v79_v49 = vrot.slane %v78_v41, 2  ;;  %v85_v50 = vadd.f32 %v84_v42, %v83_v37  ;;  %v119_v52 = vrot.slane %v118_v48, 4  ;;  %v113_v55 = vadd.f32 %v112_v47, %v111_v44 }
  0x10   :  { %v99_v51 = vadd.f32 %v98_v43, %v97_v39  ;;  %v93_v53 = vrot.slane %v92_v45, 2  ;;  %v107_v54 = vrot.slane %v106_v46, 2  ;;  %v125_v56 = vsel %vm75_vm2, %v66_v33, 0.0 }
  0x11   :  { %v80_v57 = vadd.f32 %v79_v49, %v78_v41  ;;  %v86_v58 = vrot.slane %v85_v50, 2  ;;  %v120_v60 = vadd.f32 %v119_v52, %v118_v48  ;;  %v114_v63 = vrot.slane %v113_v55, 2 }
  0x12   :  { %v100_v59 = vrot.slane %v99_v51, 2  ;;  %v94_v61 = vadd.f32 %v93_v53, %v92_v45  ;;  %v108_v62 = vadd.f32 %v107_v54, %v106_v46  ;;  %v126_v0 = vrot.slane %v125_v56, 4 }
  0x13   :  { %v81_v1 = vrot.slane %v80_v57, 1  ;;  %v87_v2 = vadd.f32 %v86_v58, %v85_v50  ;;  %v121_v4 = vrot.slane %v120_v60, 2  ;;  %v115_v7 = vadd.f32 %v114_v63, %v113_v55 }
  0x14   :  { %v101_v3 = vadd.f32 %v100_v59, %v99_v51  ;;  %v95_v5 = vrot.slane %v94_v61, 1  ;;  %v109_v6 = vrot.slane %v108_v62, 1  ;;  %v127_v8 = vadd.f32 %v126_v0, %v125_v56 }
  0x15   :  { %v82_v11 = vadd.f32 %v81_v1, %v80_v57  ;;  %v88_v12 = vrot.slane %v87_v2, 1  ;;  %v122_v14 = vadd.f32 %v121_v4, %v120_v60  ;;  %v116_v18 = vrot.slane %v115_v7, 1 }
  0x16   :  { %v102_v13 = vrot.slane %v101_v3, 1  ;;  %v96_v16 = vadd.f32 %v95_v5, %v94_v61  ;;  %v110_v17 = vadd.f32 %v109_v6, %v108_v62  ;;  %v128_v21 = vrot.slane %v127_v8, 2 }
  0x17   :  { %v89_v22 = vadd.f32 %v88_v12, %v87_v2  ;;  %v123_v24 = vrot.slane %v122_v14, 1  ;;  %v199_v25 = vsel %vm196_vm1, %v461_v10, -inf  ;;  %v117_v29 = vadd.f32 %v116_v18, %v115_v7 }
  0x18   :  { %v103_v23 = vadd.f32 %v102_v13, %v101_v3  ;;  %v129_v30 = vadd.f32 %v128_v21, %v127_v8  ;;  %v200_v31 = vsel %vm196_vm1, %v466_v15, -inf  ;;  %v201_v32 = vmax.f32 %v444_v27, %v448_v28 }
  0x19   :  { %v140_v33 = vcombine.low %v82_v11, %v89_v22  ;;  %v202_v35 = vmax.f32 %v199_v25, %v200_v31  ;;  %v124_v36 = vadd.f32 %v123_v24, %v122_v14  ;;  %v142_v38 = vcombine.low %v110_v17, %v117_v29 }
  0x1a   :  { %v141_v34 = vcombine.low %v96_v16, %v103_v23  ;;  %v130_v37 = vrot.slane %v129_v30, 1  ;;  %v264_v50 = vsub.s32 0, %v425_v9  ;;  %v268_v53 = vsub.s32 1, %v425_v9 }
  0x1b   :  { %v150_v39 = vrot.slane %v140_v33, %v440_v26  ;;  %v203_v41 = vmax.f32 %v201_v32, %v202_v35  ;;  %v164_v45 = vrot.slane %v142_v38, %v440_v26  ;;  %v272_v54 = vsub.s32 2, %v425_v9 }
  0x1c   :  { %v157_v40 = vrot.slane %v141_v34, %v440_v26  ;;  %v131_v42 = vadd.f32 %v130_v37, %v129_v30  ;;  %v276_v55 = vsub.s32 3, %v425_v9  ;;  %v280_v56 = vsub.s32 4, %v425_v9 }
  0x1d   :  { %v204_v43 = vrot.slane %v203_v41, 4  ;;  %v284_v59 = vsub.s32 5, %v425_v9  ;;  %v288_v1 = vsub.s32 6, %v425_v9  ;;  %v292_v6 = vsub.s32 7, %v425_v9 }
  0x1e   :  { %v143_v44 = vcombine.low %v124_v36, %v131_v42  ;;  %v172_v46 = vcombine.low %v150_v39, %v157_v40  ;;  %v238_v36 = vsel %vm196_vm1, %v432_v19, 0.0  ;;  %v239_v37 = vsel %vm196_vm1, %v437_v20, 0.0 }
  0x1f   :  { %v205_v47 = vmax.f32 %v203_v41, %v204_v43  ;;  %v240_v38 = vadd.f32 %v239_v37, %v238_v36  ;;  %v241_v40 = vsel %vm196_vm1, %v461_v10, 0.0 }
  0x20   :  { %v171_v27 = vrot.slane %v143_v44, %v440_v26  ;;  %v180_v49 = vrot.slane %v172_v46, %v440_v26 }
  0x21   :  { %v206_v28 = vrot.slane %v205_v47, 2 }
  0x22   :  { %v173_v48 = vcombine.low %v164_v45, %v171_v27  ;;  %v242_v27 = vadd.f32 %v241_v40, %v240_v38 }
  0x23   :  { %v207_v51 = vmax.f32 %v205_v47, %v206_v28 }
  0x24   :  { %v187_v52 = vrot.slane %v173_v48, %v440_v26 }
  0x25   :  { %v208_v57 = vrot.slane %v207_v51, 1 }
  0x26   :  { %v188_v58 = vcombine.low %v180_v49, %v187_v52 }
  0x27   :  { %v486_v60 = vmax.f32 %v207_v51, %v208_v57 }
  0x28   :  { %v265_v61 = vrot.slane %v188_v58, %v264_v50  ;;  %v269_v62 = vrot.slane %v188_v58, %v268_v53  ;;  %v273_v63 = vrot.slane %v188_v58, %v272_v54  ;;  %v277_v0 = vrot.slane %v188_v58, %v276_v55 }
  0x29   :  { %v281_v26 = vrot.slane %v188_v58, %v280_v56  ;;  %v285_v5 = vrot.slane %v188_v58, %v284_v59  ;;  %v210_v11 = vsub.f32 %v432_v19, %v486_v60  ;;  %v211_v12 = vsub.f32 %v437_v20, %v486_v60 }
  0x2a   :  { %v303_v2 = vsel %vm302_vm3, %v265_v61, 0.0  ;;  %v304_v3 = vsel %vm302_vm3, %v269_v62, 0.0  ;;  %v306_v4 = vsel %vm302_vm3, %v273_v63, 0.0  ;;  %v308_v8 = vsel %vm302_vm3, %v277_v0, 0.0 }
  0x2b   :  { %v305_v7 = vadd.f32 %v304_v3, %v303_v2  ;;  %v212_v13 = vsub.f32 %v461_v10, %v486_v60  ;;  %v310_v16 = vsel %vm302_vm3, %v281_v26, 0.0  ;;  %v213_v17 = vsub.f32 %v466_v15, %v486_v60  ;;  %v253_v26 = vld [vmem:[#allocation3] sm:$0x1] }
  0x2c   :  { %v289_v18 = vrot.slane %v188_v58, %v288_v1  ;;  %v214_v9 = vmul.f32 1.442695, %v210_v11  ;;  %v216_v21 = vmul.f32 1.442695, %v211_v12  ;;  %v293_v25 = vrot.slane %v188_v58, %v292_v6 }
  0x2d   :  { %v307_v14 = vadd.f32 %v306_v4, %v305_v7  ;;  %v218_v22 = vmul.f32 1.442695, %v212_v13  ;;  %v220_v24 = vmul.f32 1.442695, %v213_v17  ;;  %v312_v29 = vsel %vm302_vm3, %v285_v5, 0.0 }
  0x2e   :  { %365 = vpow2.f32 %v214_v9  ;;  %v314_v31 = vsel %vm302_vm3, %v289_v18, 0.0  ;;  %v316_v33 = vsel %vm302_vm3, %v293_v25, 0.0  ;;  %v243_v20 = vsel %vm196_vm1, %v466_v15, 0.0 }
  0x2f   :  { %v309_v23 = vadd.f32 %v308_v8, %v307_v14  ;;  %367 = vpow2.f32 %v216_v21  ;;  %v244_v49 = vadd.f32 %v243_v20, %v242_v27 }
  0x30   :  { %369 = vpow2.f32 %v218_v22 }
  0x31   :  { %v311_v30 = vadd.f32 %v310_v16, %v309_v23  ;;  %371 = vpow2.f32 %v220_v24  ;;  %v245_v51 = vrot.slane %v244_v49, 4 }
  0x33   :  { %v313_v32 = vadd.f32 %v312_v29, %v311_v30  ;;  %v246_v54 = vadd.f32 %v245_v51, %v244_v49 }
  0x35   :  { %v315_v34 = vadd.f32 %v314_v31, %v313_v32  ;;  %v247_v57 = vrot.slane %v246_v54, 2 }
  0x37   :  { %v317_v35 = vadd.f32 %v316_v33, %v315_v34  ;;  %v248_v58 = vadd.f32 %v247_v57, %v246_v54 }
  0x39   :  { %318 = vadd.xlane.f32.xlu0 %v317_v35  ;;  %v249_v59 = vrot.slane %v248_v58, 1 }
  0x3b   :  { %v366_v39 = vpop.eup %365  ;;  %v250_v61 = vadd.f32 %v249_v59, %v248_v58 }
  0x3c   :  { %v368_v41 = vpop.eup %367  ;;  %v222_v42 = vsel %vm196_vm1, %v366_v39, 0.0 }
  0x3d   :  { %v370_v43 = vpop.eup %369  ;;  %v223_v44 = vsel %vm196_vm1, %v368_v41, 0.0  ;;  %v251_v0 = vmul.f32 0.03125, %v250_v61 }
  0x3e   :  { %v372_v45 = vpop.eup %371  ;;  %v224_v46 = vadd.f32 %v223_v44, %v222_v42  ;;  %v225_v47 = vsel %vm196_vm1, %v370_v43, 0.0 }
  0x3f   :  { %v227_v19 = vsel %vm196_vm1, %v372_v45, 0.0 }
  0x40   :  { %v226_v28 = vadd.f32 %v225_v47, %v224_v46 }
  0x42   :  { %v228_v48 = vadd.f32 %v227_v19, %v226_v28 }
  0x44   :  { %v229_v10 = vrot.slane %v228_v48, 4 }
  0x46   :  { %v230_v50 = vadd.f32 %v229_v10, %v228_v48 }
  0x48   :  { %v231_v52 = vrot.slane %v230_v50, 2 }
  0x4a   :  { %v232_v53 = vadd.f32 %v231_v52, %v230_v50 }
  0x4c   :  { %v233_v55 = vrot.slane %v232_v53, 1 }
  0x4e   :  { %v234_v56 = vadd.f32 %v233_v55, %v232_v53 }
  0x50   :  { %373 = vlog2.f32 %v234_v56 }
  0x5d   :  { %v374_v62 = vpop.eup %373 }
  0x5e   :  { %v236_v63 = vmul.f32 0.6931472, %v374_v62 }
  0x60   :  { %v237_v15 = vadd.f32 %v236_v63, %v486_v60 }
  0x62   :  { %v252_v1 = vsub.f32 %v237_v15, %v251_v0 }
  0x64   :  { %v254_v2 = vadd.f32 %v253_v26, %v252_v1 }
  0x66   :  { %256 = vst.msk [vmem:[#allocation3] sm:$0x1] %vm20_vm0, %v254_v2 }
  0x6d   :  { %v329_v3 = vld [vmem:[#allocation3] sm:$0x1] }
  0x6e   :  { %v330_v4 = vsel %vm20_vm0, %v329_v3, 0.0 }
  0x6f   :  { %331 = vadd.xlane.f32.xlu0 %v330_v4 }
  0xc2   :  { %v319_v5 = vpop.xlane.xlu0 %318 }
  0xc3   :  { %v320_v6 = vrot.slane %v319_v5, 4 }
  0xc5   :  { %v321_v7 = vadd.f32 %v320_v6, %v319_v5 }
  0xc7   :  { %v322_v8 = vrot.slane %v321_v7, 2 }
  0xc9   :  { %v323_v11 = vadd.f32 %v322_v8, %v321_v7 }
  0xcb   :  { %v324_v12 = vrot.slane %v323_v11, 1 }
  0xcd   :  { %v325_v13 = vadd.f32 %v324_v12, %v323_v11 }
  0xcf   :  { %357 = vpush %v325_v13 }
  0xf8   :  { %v332_v14 = vpop.xlane.xlu0 %331 }
  0xf9   :  { %v333_v16 = vrot.slane %v332_v14, 4 }
  0xfb   :  { %v334_v60 = vadd.f32 %v333_v16, %v332_v14 }
  0xfd   :  { %v335_v17 = vrot.slane %v334_v60, 2 }
  0xff   :  { %v336_v18 = vadd.f32 %v335_v17, %v334_v60 }
 0x100   :  { %s358_s2 = spop %357 }
 0x101   :  { %328 = sst [smem:[#allocation4]] %s358_s2  ;;  %v337_v9 = vrot.slane %v336_v18, 1 }
 0x103   :  { %v338_v21 = vadd.f32 %v337_v9, %v336_v18 }
 0x105   :  { %359 = vpush %v338_v21 }
 0x136   :  { %s360_s29 = spop %359 }
 0x137   :  { %341 = sst [smem:[#allocation4 + $0x1]] %s360_s29 }
 0x138   :  { %386 = shalt.err (!%p383_p4)
}
 0x139   :  { %s392_s4 = smov [#allocation4]  }
 0x13a   :  { %351 = dma.smem_to_vmem %s392_s4, 16, %s349_s28, [#allocation5]  }
 0x13b   :  { %387 = dma.done.wait [#allocation5], 16  }
 0x13c   :  { %388 = vsyncadd [#allocation5], 4294967280 }
 0x13d   :  { %355 = sfence }
 0x13e   :  { %356 = vsyncpa [#allocation5], 1 }

</bundles_post_ra>
